<compile_context>
chip_gen: v6e
topology: v6e:2x2x1
jax: 0.10.0
libtpu: 0.0.40
codegen_flags: <defaults>
</compile_context>

<pallas_src>
import functools

import jax
import jax.numpy as jnp
from jax.experimental import pallas as pl
from jax.experimental.pallas import tpu as pltpu


_KH_UNROLL_MAX = 8   # above this, loop over window-rows with pl.loop instead of unrolling


def _vmem_budgets():
    """(band_budget_bytes, vmem_limit_bytes) derived from the device generation."""
    cap = None
    try:
        cap = pltpu.get_tpu_info().vmem_capacity_bytes
    except Exception:
        cap = None
    if cap is not None and cap >= 96 * 1024 * 1024:
        # v5e / v6e class: 128 MiB physical VMEM per TensorCore.
        return 12 * 1024 * 1024, 64 * 1024 * 1024
    # v7x class (64 MiB per TensorCore) or unknown: stay conservative.
    return 8 * 1024 * 1024, 48 * 1024 * 1024


def _pick_band_rows(nH, nW, ws, C, itemsize, budget_bytes, min_bands):
    """Largest divisor kH of nH such that one (kH*ws, W*C) output band fits the budget
    and at least `min_bands` bands remain (keeps a parallel grid axis feeding 2 TCs)."""
    band_row_bytes = ws * (nW * ws * C) * itemsize   # one window-row worth of image
    best = 1
    for k in range(1, nH + 1):
        if nH % k:
            continue
        if k * band_row_bytes > budget_bytes:
            continue
        if nH // k < min_bands:
            continue
        best = k
    return best


def _make_kernel(nW, ws, C, kH, shift, WC):
    """Kernel for one (batch, band) grid step.

    shift > 0 : kernel(prev_ref, cur_ref, o_ref)
    shift == 0: kernel(cur_ref, o_ref)

      prev_ref: (nW, ws, ws*C)      window-row band directly above this output band
      cur_ref : (kH, nW, ws, ws*C)  this band's window-rows
      o_ref   : (kH*ws, W*C)        output rows of this band (already cyclically shifted)
    """
    wsC = ws * C
    sC = shift * C
    lane_aligned = (wsC % 128 == 0) and (sC % 128 == 0)

    def row_value(block, nrows):
        # One (nrows, W*C) slab of output rows; W-shift fused into the operand order.
        # block(wi) -> (nrows, ws*C) source block of window wi.
        if shift == 0:
            parts = [block(wi) for wi in range(nW)]
        else:
            parts = ([block(nW - 1)[:, wsC - sC:]]
                     + [block(wi) for wi in range(nW - 1)]
                     + [block(nW - 1)[:, :wsC - sC]])
        return parts[0] if len(parts) == 1 else jnp.concatenate(parts, axis=1)

    def store_rows(o_ref, row0, nrows, block):
        # Write output rows [row0, row0+nrows); W-shift folded into lane addressing.
        rows = pl.ds(row0, nrows)
        if lane_aligned:
            # Direct, 128-aligned lane stores; no concat tree, no second relayout.
            for wi in range(nW - 1):
                o_ref[rows, wi * wsC + sC:(wi + 1) * wsC + sC] = block(wi)
            last = block(nW - 1)
            if sC == 0:
                o_ref[rows, (nW - 1) * wsC:WC] = last
            else:
                o_ref[rows, (nW - 1) * wsC + sC:WC] = last[:, :wsC - sC]
                o_ref[rows, 0:sC] = last[:, wsC - sC:]
        else:
            o_ref[rows, :] = row_value(block, nrows)

    def row_offset(kh, extra):
        if isinstance(kh, int):
            return kh * ws + extra
        return pl.multiple_of(kh * ws, ws) + extra

    if shift == 0:
        def kernel(cur_ref, o_ref):
            def emit(kh):
                store_rows(o_ref, row_offset(kh, 0), ws,
                           lambda wi: cur_ref[kh, wi, :, :])
            if kH <= _KH_UNROLL_MAX:
                for kh in range(kH):
                    emit(kh)
            else:
                @pl.loop(0, kH)
                def _(kh):
                    emit(kh)
        return kernel

    def kernel(prev_ref, cur_ref, o_ref):
        # Rows [0, shift): tail of the window-row band directly above this band
        # (H wrap-around handled by prev_spec's modular index_map).
        store_rows(o_ref, 0, shift, lambda wi: prev_ref[wi, ws - shift:, :])

        # Interior window-rows land contiguously at a +shift row offset.
        def emit(kh):
            store_rows(o_ref, row_offset(kh, shift), ws,
                       lambda wi: cur_ref[kh, wi, :, :])
        if kH - 1 <= _KH_UNROLL_MAX:
            for kh in range(kH - 1):
                emit(kh)
        else:
            @pl.loop(0, kH - 1)
            def _(kh):
                emit(kh)

        # Last window-row of the band: only its first ws-shift rows stay inside this
        # band; slice BEFORE assembling (its tail is the next band's "prev" rows).
        store_rows(o_ref, (kH - 1) * ws + shift, ws - shift,
                   lambda wi: cur_ref[kH - 1, wi, :ws - shift, :])

    return kernel


@functools.partial(jax.jit, static_argnums=(1, 2, 3))
def uncyc_shft_wndw_partition(windows, shape, window_size, cyc_shft):
    """Pallas TPU implementation of UnCycShftWndwPartition.forward.

    windows: (B*nH*nW, ws, ws, C)
    shape:   static tuple (B, H, W, C)
    returns: (B, H, W, C)
    """
    B, H, W, C = shape
    ws = window_size
    if H % ws or W % ws:
        raise ValueError("H and W must be multiples of window_size")
    nH, nW = H // ws, W // ws
    shift = (ws // 2) if cyc_shft else 0
    wsC, WC = ws * C, W * C

    # Lane-dense view: channels folded into the lane axis (free reshape).
    w5 = windows.reshape(B, nH, nW, ws, wsC)

    band_budget, vmem_limit = _vmem_budgets()
    min_bands = 2 if (B < 2 and nH >= 2) else 1
    kH = _pick_band_rows(nH, nW, ws, C, windows.dtype.itemsize, band_budget, min_bands)
    bandH = kH * ws
    n_bands = nH // kH

    kernel = _make_kernel(nW, ws, C, kH, shift, WC)

    cur_spec = pl.BlockSpec((None, kH, nW, ws, wsC), lambda b, ho: (b, ho, 0, 0, 0))
    out_spec = pl.BlockSpec((None, bandH, WC), lambda b, ho: (b, ho, 0))

    if shift > 0:
        # Window-row band just above this output band (modular wrap along H).
        prev_spec = pl.BlockSpec(
            (None, None, nW, ws, wsC),
            lambda b, ho: (b, (ho * kH + nH - 1) % nH, 0, 0, 0))
        in_specs = [prev_spec, cur_spec]
        operands = (w5, w5)
    else:
        in_specs = [cur_spec]
        operands = (w5,)

    out = pl.pallas_call(
        kernel,
        out_shape=jax.ShapeDtypeStruct((B, H, WC), windows.dtype),
        grid=(B, n_bands),
        in_specs=in_specs,
        out_specs=out_spec,
        compiler_params=pltpu.CompilerParams(
            dimension_semantics=("parallel", "parallel"),
            vmem_limit_bytes=vmem_limit,
        ),
    )(*operands)
    return out.reshape(B, H, W, C)


def _reference(windows, shape, window_size, cyc_shft):
    """Pure-JAX reference, a transliteration of the PyTorch forward."""
    B, H, W, C = shape
    ws = window_size
    x = windows.reshape(B, H // ws, W // ws, ws, ws, C)
    x = jnp.swapaxes(x, 2, 3).reshape(B, H, W, C)
    if cyc_shft:
        x = jnp.roll(x, shift=(ws // 2, ws // 2), axis=(1, 2))
    return x


if __name__ == "__main__":
    key = jax.random.PRNGKey(0)

    # (B, H, W, C, window_size) — cover all kernel variants:
    configs = [
        (2, 16, 16, 4, 4),     # concat path, unrolled kH
        (2, 128, 32, 4, 4),    # concat path, pl.loop over kH
        (2, 16, 16, 64, 4),    # lane-aligned direct-store path, unrolled kH
        (1, 128, 16, 64, 4),   # lane-aligned direct-store path, pl.loop, forced >=2 bands
    ]

    ok = True
    for (B, H, W, C, ws) in configs:
        nH, nW = H // ws, W // ws
        key, sub = jax.random.split(key)
        windows = jax.random.normal(
            sub, (B * nH * nW, ws, ws, C), dtype=jnp.float32)
        shape = (B, H, W, C)
        for cyc_shft in (True, False):
            out = uncyc_shft_wndw_partition(windows, shape, ws, cyc_shft)
            out = jax.block_until_ready(out)
            ref = _reference(windows, shape, ws, cyc_shft)
            # Pure permutation => require exact equality.
            if out.shape != (B, H, W, C) or not bool(jnp.array_equal(out, ref)):
                ok = False

    if ok:
        print("KERNEL_OK")
    else:
        raise SystemExit("mismatch vs reference")
</pallas_src>

<mosaic_0001>
module attributes {stable_mosaic.version = 11 : i64} {
  func.func @kernel(%arg0: i32, %arg1: i32, %arg2: memref<1x1x4x4x16xf32, #tpu.memory_space<vmem>>, %arg3: memref<1x4x4x4x16xf32, #tpu.memory_space<vmem>>, %arg4: memref<1x16x64xf32, #tpu.memory_space<vmem>>) attributes {dimension_semantics = [#tpu.dimension_semantics<parallel>, #tpu.dimension_semantics<parallel>], iteration_bounds = array<i64: 2, 1>, scalar_prefetch = 0 : i64, scratch_operands = 0 : i64, tpu.core_type = #tpu.core_type<tc>, window_params = [{transform_indices = @transform_0, window_bounds = array<i64: 1, 1, 4, 4, 16>}, {transform_indices = @transform_1, window_bounds = array<i64: 1, 4, 4, 4, 16>}, {transform_indices = @transform_2, window_bounds = array<i64: 1, 16, 64>}]} {
    %c0 = arith.constant 0 : index
    %c0_0 = arith.constant 0 : index
    %c3 = arith.constant 3 : index
    %c2 = arith.constant 2 : index
    %c0_1 = arith.constant 0 : index
    %0 = vector.load %arg2[%c0, %c0_0, %c3, %c2, %c0_1] : memref<1x1x4x4x16xf32, #tpu.memory_space<vmem>>, vector<1x1x1x2x16xf32>
    %1 = vector.shape_cast %0 : vector<1x1x1x2x16xf32> to vector<2x16xf32>
    %2 = vector.extract_strided_slice %1 {offsets = [0, 8], sizes = [2, 8], strides = [1, 1]} : vector<2x16xf32> to vector<2x8xf32>
    %c0_2 = arith.constant 0 : index
    %c0_3 = arith.constant 0 : index
    %c0_4 = arith.constant 0 : index
    %c2_5 = arith.constant 2 : index
    %c0_6 = arith.constant 0 : index
    %3 = vector.load %arg2[%c0_2, %c0_3, %c0_4, %c2_5, %c0_6] : memref<1x1x4x4x16xf32, #tpu.memory_space<vmem>>, vector<1x1x1x2x16xf32>
    %4 = vector.shape_cast %3 : vector<1x1x1x2x16xf32> to vector<2x16xf32>
    %c0_7 = arith.constant 0 : index
    %c0_8 = arith.constant 0 : index
    %c1 = arith.constant 1 : index
    %c2_9 = arith.constant 2 : index
    %c0_10 = arith.constant 0 : index
    %5 = vector.load %arg2[%c0_7, %c0_8, %c1, %c2_9, %c0_10] : memref<1x1x4x4x16xf32, #tpu.memory_space<vmem>>, vector<1x1x1x2x16xf32>
    %6 = vector.shape_cast %5 : vector<1x1x1x2x16xf32> to vector<2x16xf32>
    %c0_11 = arith.constant 0 : index
    %c0_12 = arith.constant 0 : index
    %c2_13 = arith.constant 2 : index
    %c2_14 = arith.constant 2 : index
    %c0_15 = arith.constant 0 : index
    %7 = vector.load %arg2[%c0_11, %c0_12, %c2_13, %c2_14, %c0_15] : memref<1x1x4x4x16xf32, #tpu.memory_space<vmem>>, vector<1x1x1x2x16xf32>
    %8 = vector.shape_cast %7 : vector<1x1x1x2x16xf32> to vector<2x16xf32>
    %c0_16 = arith.constant 0 : index
    %c0_17 = arith.constant 0 : index
    %c3_18 = arith.constant 3 : index
    %c2_19 = arith.constant 2 : index
    %c0_20 = arith.constant 0 : index
    %9 = vector.load %arg2[%c0_16, %c0_17, %c3_18, %c2_19, %c0_20] : memref<1x1x4x4x16xf32, #tpu.memory_space<vmem>>, vector<1x1x1x2x16xf32>
    %10 = vector.shape_cast %9 : vector<1x1x1x2x16xf32> to vector<2x16xf32>
    %11 = vector.extract_strided_slice %10 {offsets = [0, 0], sizes = [2, 8], strides = [1, 1]} : vector<2x16xf32> to vector<2x8xf32>
    %12 = tpu.concatenate %2, %4, %6, %8, %11 in 1 : vector<2x8xf32>, vector<2x16xf32>, vector<2x16xf32>, vector<2x16xf32>, vector<2x8xf32> -> vector<2x64xf32>
    %c0_21 = arith.constant 0 : index
    %c0_22 = arith.constant 0 : index
    %c0_23 = arith.constant 0 : index
    %13 = vector.load %arg4[%c0_21, %c0_22, %c0_23] : memref<1x16x64xf32, #tpu.memory_space<vmem>>, vector<1x2x64xf32>
    %14 = vector.shape_cast %13 : vector<1x2x64xf32> to vector<2x64xf32>
    %15 = vector.shape_cast %12 : vector<2x64xf32> to vector<1x2x64xf32>
    tpu.vector_store %arg4[%c0_21, %c0_22, %c0_23], %15 {strides = array<i32>} : memref<1x16x64xf32, #tpu.memory_space<vmem>>, vector<1x2x64xf32>,
    %c0_24 = arith.constant 0 : index
    %c0_25 = arith.constant 0 : index
    %c3_26 = arith.constant 3 : index
    %c0_27 = arith.constant 0 : index
    %c0_28 = arith.constant 0 : index
    %16 = vector.load %arg3[%c0_24, %c0_25, %c3_26, %c0_27, %c0_28] : memref<1x4x4x4x16xf32, #tpu.memory_space<vmem>>, vector<1x1x1x4x16xf32>
    %17 = vector.shape_cast %16 : vector<1x1x1x4x16xf32> to vector<4x16xf32>
    %18 = vector.extract_strided_slice %17 {offsets = [0, 8], sizes = [4, 8], strides = [1, 1]} : vector<4x16xf32> to vector<4x8xf32>
    %c0_29 = arith.constant 0 : index
    %c0_30 = arith.constant 0 : index
    %c0_31 = arith.constant 0 : index
    %c0_32 = arith.constant 0 : index
    %c0_33 = arith.constant 0 : index
    %19 = vector.load %arg3[%c0_29, %c0_30, %c0_31, %c0_32, %c0_33] : memref<1x4x4x4x16xf32, #tpu.memory_space<vmem>>, vector<1x1x1x4x16xf32>
    %20 = vector.shape_cast %19 : vector<1x1x1x4x16xf32> to vector<4x16xf32>
    %c0_34 = arith.constant 0 : index
    %c0_35 = arith.constant 0 : index
    %c1_36 = arith.constant 1 : index
    %c0_37 = arith.constant 0 : index
    %c0_38 = arith.constant 0 : index
    %21 = vector.load %arg3[%c0_34, %c0_35, %c1_36, %c0_37, %c0_38] : memref<1x4x4x4x16xf32, #tpu.memory_space<vmem>>, vector<1x1x1x4x16xf32>
    %22 = vector.shape_cast %21 : vector<1x1x1x4x16xf32> to vector<4x16xf32>
    %c0_39 = arith.constant 0 : index
    %c0_40 = arith.constant 0 : index
    %c2_41 = arith.constant 2 : index
    %c0_42 = arith.constant 0 : index
    %c0_43 = arith.constant 0 : index
    %23 = vector.load %arg3[%c0_39, %c0_40, %c2_41, %c0_42, %c0_43] : memref<1x4x4x4x16xf32, #tpu.memory_space<vmem>>, vector<1x1x1x4x16xf32>
    %24 = vector.shape_cast %23 : vector<1x1x1x4x16xf32> to vector<4x16xf32>
    %c0_44 = arith.constant 0 : index
    %c0_45 = arith.constant 0 : index
    %c3_46 = arith.constant 3 : index
    %c0_47 = arith.constant 0 : index
    %c0_48 = arith.constant 0 : index
    %25 = vector.load %arg3[%c0_44, %c0_45, %c3_46, %c0_47, %c0_48] : memref<1x4x4x4x16xf32, #tpu.memory_space<vmem>>, vector<1x1x1x4x16xf32>
    %26 = vector.shape_cast %25 : vector<1x1x1x4x16xf32> to vector<4x16xf32>
    %27 = vector.extract_strided_slice %26 {offsets = [0, 0], sizes = [4, 8], strides = [1, 1]} : vector<4x16xf32> to vector<4x8xf32>
    %28 = tpu.concatenate %18, %20, %22, %24, %27 in 1 : vector<4x8xf32>, vector<4x16xf32>, vector<4x16xf32>, vector<4x16xf32>, vector<4x8xf32> -> vector<4x64xf32>
    %c0_49 = arith.constant 0 : index
    %c2_50 = arith.constant 2 : index
    %c0_51 = arith.constant 0 : index
    %29 = vector.load %arg4[%c0_49, %c2_50, %c0_51] : memref<1x16x64xf32, #tpu.memory_space<vmem>>, vector<1x4x64xf32>
    %30 = vector.shape_cast %29 : vector<1x4x64xf32> to vector<4x64xf32>
    %31 = vector.shape_cast %28 : vector<4x64xf32> to vector<1x4x64xf32>
    tpu.vector_store %arg4[%c0_49, %c2_50, %c0_51], %31 {strides = array<i32>} : memref<1x16x64xf32, #tpu.memory_space<vmem>>, vector<1x4x64xf32>,
    %c0_52 = arith.constant 0 : index
    %c1_53 = arith.constant 1 : index
    %c3_54 = arith.constant 3 : index
    %c0_55 = arith.constant 0 : index
    %c0_56 = arith.constant 0 : index
    %32 = vector.load %arg3[%c0_52, %c1_53, %c3_54, %c0_55, %c0_56] : memref<1x4x4x4x16xf32, #tpu.memory_space<vmem>>, vector<1x1x1x4x16xf32>
    %33 = vector.shape_cast %32 : vector<1x1x1x4x16xf32> to vector<4x16xf32>
    %34 = vector.extract_strided_slice %33 {offsets = [0, 8], sizes = [4, 8], strides = [1, 1]} : vector<4x16xf32> to vector<4x8xf32>
    %c0_57 = arith.constant 0 : index
    %c1_58 = arith.constant 1 : index
    %c0_59 = arith.constant 0 : index
    %c0_60 = arith.constant 0 : index
    %c0_61 = arith.constant 0 : index
    %35 = vector.load %arg3[%c0_57, %c1_58, %c0_59, %c0_60, %c0_61] : memref<1x4x4x4x16xf32, #tpu.memory_space<vmem>>, vector<1x1x1x4x16xf32>
    %36 = vector.shape_cast %35 : vector<1x1x1x4x16xf32> to vector<4x16xf32>
    %c0_62 = arith.constant 0 : index
    %c1_63 = arith.constant 1 : index
    %c1_64 = arith.constant 1 : index
    %c0_65 = arith.constant 0 : index
    %c0_66 = arith.constant 0 : index
    %37 = vector.load %arg3[%c0_62, %c1_63, %c1_64, %c0_65, %c0_66] : memref<1x4x4x4x16xf32, #tpu.memory_space<vmem>>, vector<1x1x1x4x16xf32>
    %38 = vector.shape_cast %37 : vector<1x1x1x4x16xf32> to vector<4x16xf32>
    %c0_67 = arith.constant 0 : index
    %c1_68 = arith.constant 1 : index
    %c2_69 = arith.constant 2 : index
    %c0_70 = arith.constant 0 : index
    %c0_71 = arith.constant 0 : index
    %39 = vector.load %arg3[%c0_67, %c1_68, %c2_69, %c0_70, %c0_71] : memref<1x4x4x4x16xf32, #tpu.memory_space<vmem>>, vector<1x1x1x4x16xf32>
    %40 = vector.shape_cast %39 : vector<1x1x1x4x16xf32> to vector<4x16xf32>
    %c0_72 = arith.constant 0 : index
    %c1_73 = arith.constant 1 : index
    %c3_74 = arith.constant 3 : index
    %c0_75 = arith.constant 0 : index
    %c0_76 = arith.constant 0 : index
    %41 = vector.load %arg3[%c0_72, %c1_73, %c3_74, %c0_75, %c0_76] : memref<1x4x4x4x16xf32, #tpu.memory_space<vmem>>, vector<1x1x1x4x16xf32>
    %42 = vector.shape_cast %41 : vector<1x1x1x4x16xf32> to vector<4x16xf32>
    %43 = vector.extract_strided_slice %42 {offsets = [0, 0], sizes = [4, 8], strides = [1, 1]} : vector<4x16xf32> to vector<4x8xf32>
    %44 = tpu.concatenate %34, %36, %38, %40, %43 in 1 : vector<4x8xf32>, vector<4x16xf32>, vector<4x16xf32>, vector<4x16xf32>, vector<4x8xf32> -> vector<4x64xf32>
    %c0_77 = arith.constant 0 : index
    %c6 = arith.constant 6 : index
    %c0_78 = arith.constant 0 : index
    %45 = vector.load %arg4[%c0_77, %c6, %c0_78] : memref<1x16x64xf32, #tpu.memory_space<vmem>>, vector<1x4x64xf32>
    %46 = vector.shape_cast %45 : vector<1x4x64xf32> to vector<4x64xf32>
    %47 = vector.shape_cast %44 : vector<4x64xf32> to vector<1x4x64xf32>
    tpu.vector_store %arg4[%c0_77, %c6, %c0_78], %47 {strides = array<i32>} : memref<1x16x64xf32, #tpu.memory_space<vmem>>, vector<1x4x64xf32>,
    %c0_79 = arith.constant 0 : index
    %c2_80 = arith.constant 2 : index
    %c3_81 = arith.constant 3 : index
    %c0_82 = arith.constant 0 : index
    %c0_83 = arith.constant 0 : index
    %48 = vector.load %arg3[%c0_79, %c2_80, %c3_81, %c0_82, %c0_83] : memref<1x4x4x4x16xf32, #tpu.memory_space<vmem>>, vector<1x1x1x4x16xf32>
    %49 = vector.shape_cast %48 : vector<1x1x1x4x16xf32> to vector<4x16xf32>
    %50 = vector.extract_strided_slice %49 {offsets = [0, 8], sizes = [4, 8], strides = [1, 1]} : vector<4x16xf32> to vector<4x8xf32>
    %c0_84 = arith.constant 0 : index
    %c2_85 = arith.constant 2 : index
    %c0_86 = arith.constant 0 : index
    %c0_87 = arith.constant 0 : index
    %c0_88 = arith.constant 0 : index
    %51 = vector.load %arg3[%c0_84, %c2_85, %c0_86, %c0_87, %c0_88] : memref<1x4x4x4x16xf32, #tpu.memory_space<vmem>>, vector<1x1x1x4x16xf32>
    %52 = vector.shape_cast %51 : vector<1x1x1x4x16xf32> to vector<4x16xf32>
    %c0_89 = arith.constant 0 : index
    %c2_90 = arith.constant 2 : index
    %c1_91 = arith.constant 1 : index
    %c0_92 = arith.constant 0 : index
    %c0_93 = arith.constant 0 : index
    %53 = vector.load %arg3[%c0_89, %c2_90, %c1_91, %c0_92, %c0_93] : memref<1x4x4x4x16xf32, #tpu.memory_space<vmem>>, vector<1x1x1x4x16xf32>
    %54 = vector.shape_cast %53 : vector<1x1x1x4x16xf32> to vector<4x16xf32>
    %c0_94 = arith.constant 0 : index
    %c2_95 = arith.constant 2 : index
    %c2_96 = arith.constant 2 : index
    %c0_97 = arith.constant 0 : index
    %c0_98 = arith.constant 0 : index
    %55 = vector.load %arg3[%c0_94, %c2_95, %c2_96, %c0_97, %c0_98] : memref<1x4x4x4x16xf32, #tpu.memory_space<vmem>>, vector<1x1x1x4x16xf32>
    %56 = vector.shape_cast %55 : vector<1x1x1x4x16xf32> to vector<4x16xf32>
    %c0_99 = arith.constant 0 : index
    %c2_100 = arith.constant 2 : index
    %c3_101 = arith.constant 3 : index
    %c0_102 = arith.constant 0 : index
    %c0_103 = arith.constant 0 : index
    %57 = vector.load %arg3[%c0_99, %c2_100, %c3_101, %c0_102, %c0_103] : memref<1x4x4x4x16xf32, #tpu.memory_space<vmem>>, vector<1x1x1x4x16xf32>
    %58 = vector.shape_cast %57 : vector<1x1x1x4x16xf32> to vector<4x16xf32>
    %59 = vector.extract_strided_slice %58 {offsets = [0, 0], sizes = [4, 8], strides = [1, 1]} : vector<4x16xf32> to vector<4x8xf32>
    %60 = tpu.concatenate %50, %52, %54, %56, %59 in 1 : vector<4x8xf32>, vector<4x16xf32>, vector<4x16xf32>, vector<4x16xf32>, vector<4x8xf32> -> vector<4x64xf32>
    %c0_104 = arith.constant 0 : index
    %c10 = arith.constant 10 : index
    %c0_105 = arith.constant 0 : index
    %61 = vector.load %arg4[%c0_104, %c10, %c0_105] : memref<1x16x64xf32, #tpu.memory_space<vmem>>, vector<1x4x64xf32>
    %62 = vector.shape_cast %61 : vector<1x4x64xf32> to vector<4x64xf32>
    %63 = vector.shape_cast %60 : vector<4x64xf32> to vector<1x4x64xf32>
    tpu.vector_store %arg4[%c0_104, %c10, %c0_105], %63 {strides = array<i32>} : memref<1x16x64xf32, #tpu.memory_space<vmem>>, vector<1x4x64xf32>,
    %c0_106 = arith.constant 0 : index
    %c3_107 = arith.constant 3 : index
    %c3_108 = arith.constant 3 : index
    %c0_109 = arith.constant 0 : index
    %c0_110 = arith.constant 0 : index
    %64 = vector.load %arg3[%c0_106, %c3_107, %c3_108, %c0_109, %c0_110] : memref<1x4x4x4x16xf32, #tpu.memory_space<vmem>>, vector<1x1x1x2x16xf32>
    %65 = vector.shape_cast %64 : vector<1x1x1x2x16xf32> to vector<2x16xf32>
    %66 = vector.extract_strided_slice %65 {offsets = [0, 8], sizes = [2, 8], strides = [1, 1]} : vector<2x16xf32> to vector<2x8xf32>
    %c0_111 = arith.constant 0 : index
    %c3_112 = arith.constant 3 : index
    %c0_113 = arith.constant 0 : index
    %c0_114 = arith.constant 0 : index
    %c0_115 = arith.constant 0 : index
    %67 = vector.load %arg3[%c0_111, %c3_112, %c0_113, %c0_114, %c0_115] : memref<1x4x4x4x16xf32, #tpu.memory_space<vmem>>, vector<1x1x1x2x16xf32>
    %68 = vector.shape_cast %67 : vector<1x1x1x2x16xf32> to vector<2x16xf32>
    %c0_116 = arith.constant 0 : index
    %c3_117 = arith.constant 3 : index
    %c1_118 = arith.constant 1 : index
    %c0_119 = arith.constant 0 : index
    %c0_120 = arith.constant 0 : index
    %69 = vector.load %arg3[%c0_116, %c3_117, %c1_118, %c0_119, %c0_120] : memref<1x4x4x4x16xf32, #tpu.memory_space<vmem>>, vector<1x1x1x2x16xf32>
    %70 = vector.shape_cast %69 : vector<1x1x1x2x16xf32> to vector<2x16xf32>
    %c0_121 = arith.constant 0 : index
    %c3_122 = arith.constant 3 : index
    %c2_123 = arith.constant 2 : index
    %c0_124 = arith.constant 0 : index
    %c0_125 = arith.constant 0 : index
    %71 = vector.load %arg3[%c0_121, %c3_122, %c2_123, %c0_124, %c0_125] : memref<1x4x4x4x16xf32, #tpu.memory_space<vmem>>, vector<1x1x1x2x16xf32>
    %72 = vector.shape_cast %71 : vector<1x1x1x2x16xf32> to vector<2x16xf32>
    %c0_126 = arith.constant 0 : index
    %c3_127 = arith.constant 3 : index
    %c3_128 = arith.constant 3 : index
    %c0_129 = arith.constant 0 : index
    %c0_130 = arith.constant 0 : index
    %73 = vector.load %arg3[%c0_126, %c3_127, %c3_128, %c0_129, %c0_130] : memref<1x4x4x4x16xf32, #tpu.memory_space<vmem>>, vector<1x1x1x2x16xf32>
    %74 = vector.shape_cast %73 : vector<1x1x1x2x16xf32> to vector<2x16xf32>
    %75 = vector.extract_strided_slice %74 {offsets = [0, 0], sizes = [2, 8], strides = [1, 1]} : vector<2x16xf32> to vector<2x8xf32>
    %76 = tpu.concatenate %66, %68, %70, %72, %75 in 1 : vector<2x8xf32>, vector<2x16xf32>, vector<2x16xf32>, vector<2x16xf32>, vector<2x8xf32> -> vector<2x64xf32>
    %c0_131 = arith.constant 0 : index
    %c14 = arith.constant 14 : index
    %c0_132 = arith.constant 0 : index
    %77 = vector.load %arg4[%c0_131, %c14, %c0_132] : memref<1x16x64xf32, #tpu.memory_space<vmem>>, vector<1x2x64xf32>
    %78 = vector.shape_cast %77 : vector<1x2x64xf32> to vector<2x64xf32>
    %79 = vector.shape_cast %76 : vector<2x64xf32> to vector<1x2x64xf32>
    tpu.vector_store %arg4[%c0_131, %c14, %c0_132], %79 {strides = array<i32>} : memref<1x16x64xf32, #tpu.memory_space<vmem>>, vector<1x2x64xf32>,
    return
  }
  func.func @transform_0(%arg0: i32, %arg1: i32) -> (i32, i32, i32, i32, i32) {
    %c4_i32 = arith.constant 4 : i32
    %0 = arith.muli %arg1, %c4_i32 : i32
    %c4_i32_0 = arith.constant 4 : i32
    %1 = arith.addi %0, %c4_i32_0 : i32
    %c1_i32 = arith.constant 1 : i32
    %2 = arith.subi %1, %c1_i32 : i32
    %c4_i32_1 = arith.constant 4 : i32
    %c0_i32 = arith.constant 0 : i32
    %3 = arith.cmpi eq, %c4_i32_1, %c0_i32 : i32
    %c1_i32_2 = arith.constant 1 : i32
    %4 = arith.select %3, %c1_i32_2, %c4_i32_1 : i32
    %5 = arith.remsi %2, %4 : i32
    %c0_i32_3 = arith.constant 0 : i32
    %6 = arith.cmpi ne, %5, %c0_i32_3 : i32
    %c0_i32_4 = arith.constant 0 : i32
    %7 = arith.cmpi slt, %5, %c0_i32_4 : i32
    %c0_i32_5 = arith.constant 0 : i32
    %8 = arith.cmpi slt, %4, %c0_i32_5 : i32
    %9 = arith.xori %7, %8 : i1
    %10 = arith.andi %9, %6 : i1
    %11 = arith.addi %5, %4 : i32
    %12 = arith.select %10, %11, %5 : i32
    %c0_i32_6 = arith.constant 0 : i32
    %c0_i32_7 = arith.constant 0 : i32
    %c0_i32_8 = arith.constant 0 : i32
    %c0_i32_9 = arith.constant 0 : i32
    return %arg0, %12, %c0_i32_6, %c0_i32_7, %c0_i32_8 : i32, i32, i32, i32, i32
  }
  func.func @transform_1(%arg0: i32, %arg1: i32) -> (i32, i32, i32, i32, i32) {
    %c0_i32 = arith.constant 0 : i32
    %c0_i32_0 = arith.constant 0 : i32
    %c0_i32_1 = arith.constant 0 : i32
    %c0_i32_2 = arith.constant 0 : i32
    return %arg0, %arg1, %c0_i32, %c0_i32_0, %c0_i32_1 : i32, i32, i32, i32, i32
  }
  func.func @transform_2(%arg0: i32, %arg1: i32) -> (i32, i32, i32) {
    %c0_i32 = arith.constant 0 : i32
    %c0_i32_0 = arith.constant 0 : i32
    return %arg0, %arg1, %c0_i32 : i32, i32, i32
  }
}

</mosaic_0001>

<bundles_post_ra>
// kernel: uncyc_shft_wndw_partition.1
= control target key start
LH: loop header
LB: loop body
LE: loop exit
PB: predicated region body
PF: predicated region fallthrough
CT: control target
= control target key end

     0   :  { %s702_s9 = smov 0   ;;  %s704_s10 = smov 0   ;;  %s791_s0 = inlined_call_operand.vmem [shape: f32[2,4,4,4,16], index: 0, kind: input, shape index: {}, may-alias: {0,1}]   ;;  %s792_s1 = inlined_call_operand.vmem [shape: f32[2,4,4,4,16], index: 1, kind: input, shape index: {}, may-alias: {0,1}]   ;;  %s793_s2 = inlined_call_operand.vmem [shape: f32[2,16,64], index: 2, kind: output, shape index: {}]  }
   0x1   :  { %s706_s11 = smov 0  }
   0x2 LB: > { %s24_s12 = sadd.s32 1, %s676_s10  ;;  %p597_p0 = scmp.ge.s32.totalorder %s680_s11, 1  ;;  %s680_s11 = sphi %s706_s11, %s12_s11   ;;  %s676_s10 = sphi %s704_s10, %s795_s10   ;;  %s672_s9 = sphi %s702_s9, %s794_s9  }
   0x3   : > { %p26_p1 = scmp.ge.s32.totalorder %s24_s12, 2  ;;  %p206_p2 = scmp.lt.s32.totalorder %s680_s11, 3 }
   0x5   : > { %s797_s12 = smov (%p26_p1, %s24_s12), 0  ;;  %p207_p3 = pnand %p597_p0, %p206_p2 }
   0x6   : > { %p274_p4 = scmp.lt.s32.totalorder (!%p207_p3), %s672_s9, 1  ;;  %s682_s21 = smov (!%p207_p3), 120  }
   0x7   : > { %210 = sbr.rel (%p207_p3) target bundleno = 181 (0xb5), region = 28  ;;  %s683_s22 = smov (!%p207_p3), 8  }
   0x8   : > { %s684_s23 = smov (!%p207_p3), 24   ;;  %s685_s24 = smov (!%p207_p3), 40  }
   0x9   : > { %s686_s25 = smov (!%p207_p3), 56  }
   0xc   : > { %s799_s9 = smov (!%p274_p4, %s672_s9), 1  ;;  %vm344_vm0 = vcmask 64512   ;;  %vm346_vm1 = vcmask 195584   ;;  %vm348_vm2 = vcmask 326656   ;;  %vm350_vm3 = vcmask 457728  }
   0xd   : > { %s628_s13 = sshll.u32 %s799_s9, 6  ;;  %s627_s26 = sshll.u32 %s799_s9, 4  ;;  %vm384_vm4 = vcmask 519168   ;;  %vm352_vm5 = vcmask 517120  }
   0xe   : > { %s726_s16 = scalar_lea.vmem %s792_s1, %s628_s13  ;;  %s625_s17 = sadd.s32 48, %s628_s13 }
   0xf   : > { %v610_v0 = vld [vmem:[%s726_s16 + $0x1c] sm:$0xf]  ;;  %v607_v1 = vld [vmem:[%s726_s16 + $0xc] sm:$0xf]  ;;  %s733_s20 = scalar_lea.vmem %s791_s0, %s625_s17  ;;  %v356_v2 = vld [vmem:[%s726_s16] sm:$0xf]  ;;  %s316_s29 = scalar_lea.vmem %s793_s2, %s627_s26 }
  0x10   : > { %395 = vrot.lane.b32.xlu0 %v610_v0, %s682_s21  ;;  %362 = vrot.lane.b32.xlu1 %v607_v1, %s682_s21  ;;  %v604_v3 = vld [vmem:[%s733_s20 + $0xe] sm:$0x3]  ;;  %v611_v4 = vld [vmem:[%s726_s16 + $0x10] sm:$0xf] }
  0x11   : > { %v320_v5 = vld [vmem:[%s733_s20 + $0x2] sm:$0x3]  ;;  %v614_v7 = vld [vmem:[%s726_s16 + $0x2c] sm:$0xf]  ;;  %v619_v8 = vld [vmem:[%s726_s16 + $0x30] sm:$0x3] }
  0x12   : > { %v615_v6 = vld [vmem:[%s726_s16 + $0x20] sm:$0xf]  ;;  %v618_v9 = vld [vmem:[%s726_s16 + $0x3c] sm:$0x3]  ;;  %v608_v10 = vld [vmem:[%s726_s16 + $0x4] sm:$0xf] }
  0x13   : > { %v605_v11 = vld [vmem:[%s733_s20 + $0x6] sm:$0x3]  ;;  %v612_v13 = vld [vmem:[%s726_s16 + $0x14] sm:$0xf]  ;;  %v606_v14 = vld [vmem:[%s733_s20 + $0xa] sm:$0x3] }
  0x14   : > { %366 = vrot.lane.b32.xlu1 %v356_v2, %s683_s22  ;;  %326 = vrot.lane.b32.xlu0 %v604_v3, %s682_s21  ;;  %v616_v12 = vld [vmem:[%s726_s16 + $0x24] sm:$0xf]  ;;  %v620_v15 = vld [vmem:[%s726_s16 + $0x34] sm:$0x3] }
  0x15   : > { %v613_v16 = vld [vmem:[%s726_s16 + $0x18] sm:$0xf]  ;;  %v609_v17 = vld [vmem:[%s726_s16 + $0x8] sm:$0xf] }
  0x16   : > { %v621_v18 = vld [vmem:[%s726_s16 + $0x38] sm:$0x3]  ;;  %v617_v19 = vld [vmem:[%s726_s16 + $0x28] sm:$0xf] }
  0x18   : > { %399 = vrot.lane.b32.xlu1 %v611_v4, %s683_s22  ;;  %330 = vrot.lane.b32.xlu0 %v320_v5, %s683_s22 }
  0x1c   : > { %431 = vrot.lane.b32.xlu1 %v615_v6, %s683_s22  ;;  %427 = vrot.lane.b32.xlu0 %v614_v7, %s682_s21 }
  0x20   : > { %463 = vrot.lane.b32.xlu1 %v619_v8, %s683_s22  ;;  %459 = vrot.lane.b32.xlu0 %v618_v9, %s682_s21 }
  0x24   : > { %370 = vrot.lane.b32.xlu1 %v608_v10, %s684_s23  ;;  %334 = vrot.lane.b32.xlu0 %v605_v11, %s684_s23 }
  0x28   : > { %435 = vrot.lane.b32.xlu1 %v616_v12, %s684_s23  ;;  %403 = vrot.lane.b32.xlu0 %v612_v13, %s684_s23 }
  0x2c   : > { %338 = vrot.lane.b32.xlu1 %v606_v14, %s685_s24  ;;  %467 = vrot.lane.b32.xlu0 %v620_v15, %s684_s23 }
  0x30   : > { %407 = vrot.lane.b32.xlu1 %v613_v16, %s685_s24  ;;  %374 = vrot.lane.b32.xlu0 %v609_v17, %s685_s24 }
  0x34   : > { %471 = vrot.lane.b32.xlu1 %v621_v18, %s685_s24  ;;  %439 = vrot.lane.b32.xlu0 %v617_v19, %s685_s24 }
  0x38   : > { %377 = vrot.lane.b32.xlu1 %v607_v1, %s686_s25  ;;  %341 = vrot.lane.b32.xlu0 %v604_v3, %s686_s25 }
  0x3c   : > { %442 = vrot.lane.b32.xlu1 %v614_v7, %s686_s25  ;;  %410 = vrot.lane.b32.xlu0 %v610_v0, %s686_s25 }
  0x40   : > { %474 = vrot.lane.b32.xlu0 %v618_v9, %s686_s25 }
  0x82   : > { %v396_v20 = vpop.permute.xlu0 %395  ;;  %v363_v21 = vpop.permute.xlu1 %362 }
  0x86   : > { %v367_v22 = vpop.permute.xlu1 %366  ;;  %v327_v23 = vpop.permute.xlu0 %326 }
  0x87   : > { %v380_v40 = vsel %vm344_vm0, %v363_v21, %v367_v22 }
  0x8a   : > { %v400_v24 = vpop.permute.xlu1 %399  ;;  %v331_v25 = vpop.permute.xlu0 %330 }
  0x8b   : > { %v345_v41 = vsel %vm344_vm0, %v327_v23, %v331_v25  ;;  %v413_v50 = vsel %vm344_vm0, %v396_v20, %v400_v24 }
  0x8e   : > { %v432_v26 = vpop.permute.xlu1 %431  ;;  %v428_v27 = vpop.permute.xlu0 %427 }
  0x8f   : > { %v445_v51 = vsel %vm344_vm0, %v428_v27, %v432_v26 }
  0x92   : > { %v464_v28 = vpop.permute.xlu1 %463  ;;  %v460_v29 = vpop.permute.xlu0 %459 }
  0x93   : > { %v477_v60 = vsel %vm344_vm0, %v460_v29, %v464_v28 }
  0x96   : > { %v371_v30 = vpop.permute.xlu1 %370  ;;  %v335_v31 = vpop.permute.xlu0 %334 }
  0x97   : > { %v381_v42 = vsel %vm346_vm1, %v380_v40, %v371_v30  ;;  %v347_v43 = vsel %vm346_vm1, %v345_v41, %v335_v31 }
  0x9a   : > { %v436_v32 = vpop.permute.xlu1 %435  ;;  %v404_v33 = vpop.permute.xlu0 %403 }
  0x9b   : > { %v446_v52 = vsel %vm346_vm1, %v445_v51, %v436_v32  ;;  %v414_v53 = vsel %vm346_vm1, %v413_v50, %v404_v33 }
  0x9e   : > { %v339_v34 = vpop.permute.xlu1 %338  ;;  %v468_v35 = vpop.permute.xlu0 %467 }
  0x9f   : > { %v349_v44 = vsel %vm348_vm2, %v347_v43, %v339_v34  ;;  %v478_v61 = vsel %vm346_vm1, %v477_v60, %v468_v35 }
  0xa2   : > { %v408_v36 = vpop.permute.xlu1 %407  ;;  %v375_v37 = vpop.permute.xlu0 %374 }
  0xa3   : > { %v382_v45 = vsel %vm348_vm2, %v381_v42, %v375_v37  ;;  %v415_v54 = vsel %vm348_vm2, %v414_v53, %v408_v36 }
  0xa6   : > { %v472_v38 = vpop.permute.xlu1 %471  ;;  %v440_v39 = vpop.permute.xlu0 %439 }
  0xa7   : > { %v447_v55 = vsel %vm348_vm2, %v446_v52, %v440_v39  ;;  %v479_v62 = vsel %vm348_vm2, %v478_v61, %v472_v38 }
  0xaa   : > { %v378_v46 = vpop.permute.xlu1 %377  ;;  %v342_v47 = vpop.permute.xlu0 %341 }
  0xab   : > { %v383_v48 = vsel %vm350_vm3, %v382_v45, %v378_v46  ;;  %v351_v49 = vsel %vm350_vm3, %v349_v44, %v342_v47 }
  0xac   : > { %385 = vst.msk [vmem:[%s316_s29 + $0x2] sm:$0xf] %vm384_vm4, %v383_v48 }
  0xad   : > { %353 = vst.msk [vmem:[%s316_s29] sm:$0x3] %vm352_vm5, %v351_v49 }
  0xae   : > { %v443_v56 = vpop.permute.xlu1 %442  ;;  %v411_v57 = vpop.permute.xlu0 %410 }
  0xaf   : > { %v448_v58 = vsel %vm350_vm3, %v447_v55, %v443_v56  ;;  %v416_v59 = vsel %vm350_vm3, %v415_v54, %v411_v57 }
  0xb0   : > { %449 = vst.msk [vmem:[%s316_s29 + $0xa] sm:$0xf] %vm384_vm4, %v448_v58  ;;  %417 = vst.msk [vmem:[%s316_s29 + $0x6] sm:$0xf] %vm384_vm4, %v416_v59 }
  0xb2   : > { %v475_v63 = vpop.permute.xlu0 %474 }
  0xb3   : > { %v480_v0 = vsel %vm350_vm3, %v479_v62, %v475_v63 }
  0xb4   : > { %481 = vst.msk [vmem:[%s316_s29 + $0xe] sm:$0x3] %vm352_vm5, %v480_v0 }
  0xb5 PF: > { %s12_s11 = sadd.s32 1, %s680_s11   ;;  %s794_s9 = smov %s676_s10 }
  0xb6   : > { %p9_p5 = scmp.ge.s32.totalorder %s12_s11, 4   ;;  %s795_s10 = smov %s797_s12 }
  0xb8   :  { %11 = sbr.rel (!%p9_p5) target bundleno = 2 (0x2), region = 79 }

</bundles_post_ra>
